<compile_context>
chip_gen: v5e
topology: v5e:2x2
jax: 0.10.0
libtpu: 0.0.40
codegen_flags: <defaults>
</compile_context>

<pallas_src>
import jax
import jax.numpy as jnp
from jax.experimental import pallas as pl
from jax.experimental.pallas import tpu as pltpu


def churn_mlp_kernel(x_ref, w1_ref, b1_ref, w2_ref, b2_ref, w3_ref, b3_ref, o_ref):
    # x tile: (TB, D) f32 -> bf16 (VPU cast, hidden under the input DMA pipeline).
    x = x_ref[...].astype(jnp.bfloat16)

    # fc1: h1^T = relu(W1 @ x^T + b1) -> (128, TB).  NT dot_general contracts the
    # D axis of both operands, so x needs no in-kernel transpose; result has
    # features on sublanes, batch on lanes.
    h1 = jax.lax.dot_general(
        w1_ref[...], x, (((1,), (1,)), ((), ())),
        preferred_element_type=jnp.float32)
    h1 = jnp.maximum(h1 + b1_ref[...], 0.0)
    # dropout(0.3): identity in eval mode.

    # fc2: h2^T = relu(W2 @ h1^T + b2) -> (64, TB).
    h2 = jnp.dot(w2_ref[...], h1.astype(jnp.bfloat16),
                 preferred_element_type=jnp.float32)
    h2 = jnp.maximum(h2 + b2_ref[...], 0.0)
    # dropout(0.3): identity in eval mode.

    # fc3 (64 -> 1): VPU multiply + sublane reduce (keeps the MXU free); result is
    # already a lane-dense (1, TB) row -> unmasked stores, contiguous output DMA.
    out = jnp.sum(h2 * w3_ref[...], axis=0, keepdims=True) + b3_ref[...]
    o_ref[...] = out[None].astype(o_ref.dtype)          # (1, 1, TB) block


def churn_predictor_forward(x, params, tile_b=8192):
    """x: (B, input_size) float32.
    params (PyTorch nn.Linear layout): w1 (128, D), b1 (128, 1), w2 (64, 128),
    b2 (64, 1), w3 (64, 1) column, b3 (1, 1).  All float32 (w1/w2 are cast to
    bf16 here for the MXU; accumulation stays f32)."""
    B, D = x.shape
    w1 = params["w1"].astype(jnp.bfloat16)               # (128, D)
    w2 = params["w2"].astype(jnp.bfloat16)               # (64, 128)
    b1, b2, w3, b3 = params["b1"], params["b2"], params["w3"], params["b3"]
    H1, H2 = w1.shape[0], w2.shape[0]

    # Generation-aware tile / VMEM budget.
    kind = ""
    try:
        kind = jax.devices()[0].device_kind.lower()
    except Exception:
        pass
    is_v7 = ("v7" in kind) or ("tpu7" in kind) or ("7x" in kind)
    if any(t in kind for t in ("v4", "v5", "v6")):
        vmem_limit, tile_cap = 96 * 1024 * 1024, 16384    # 128 MiB physical VMEM
    else:                                                 # v7x (64 MiB) / unknown
        vmem_limit, tile_cap = 48 * 1024 * 1024, 8192

    # Batch tile: multiple of 128 (lane-dense output row); if the whole batch fits
    # in one tile, use exactly B so every block equals the full array (no padding,
    # no raggedness).  Otherwise the last block is ragged and Pallas handles it.
    tb = max(128, (min(int(tile_b), tile_cap) // 128) * 128)
    if B <= tb:
        tb = B
    num_tiles = pl.cdiv(B, tb)
    grid = (num_tiles,)

    # Constant index_map => weights/biases DMA'd once, VMEM-resident across steps.
    def resident(a):
        return pl.BlockSpec(a.shape, lambda i: (0,) * a.ndim)

    if is_v7 and num_tiles >= 2:
        dim_sem = (pltpu.CORE_PARALLEL,)    # actually split batch tiles across 2 TCs
    else:
        dim_sem = ("parallel",)

    weight_bytes = sum(int(a.size) * a.dtype.itemsize for a in (w1, b1, w2, b2, w3, b3))
    cost = pl.CostEstimate(
        flops=2 * B * (D * H1 + H1 * H2 + H2),
        transcendentals=0,
        bytes_accessed=B * D * 4 + weight_bytes + B * 4,
    )

    out = pl.pallas_call(
        churn_mlp_kernel,
        out_shape=jax.ShapeDtypeStruct((num_tiles, 1, tb), jnp.float32),
        grid=grid,
        in_specs=[
            pl.BlockSpec((tb, D), lambda i: (i, 0)),      # x: streamed batch tiles
            resident(w1), resident(b1),
            resident(w2), resident(b2),
            resident(w3), resident(b3),
        ],
        out_specs=pl.BlockSpec((1, 1, tb), lambda i: (i, 0, 0)),  # lane-dense row/tile
        compiler_params=pltpu.CompilerParams(
            dimension_semantics=dim_sem,
            vmem_limit_bytes=vmem_limit,
        ),
        cost_estimate=cost,
    )(x, w1, b1, w2, b2, w3, b3)

    # (num_tiles, 1, tb) -> flat rows in batch order -> drop ragged tail -> (B, 1).
    return out.reshape(-1)[:B].reshape(B, 1)


def init_params(key, input_size):
    """Deterministic synthetic init matching nn.Linear (PyTorch (out, in) layout;
    biases and the fc3 weight stored as columns for the transposed kernel)."""
    k1, k2, k3, k4, k5, k6 = jax.random.split(key, 6)

    def lin(kw, kb, fan_in, fan_out):
        bound = 1.0 / float(fan_in) ** 0.5
        w = jax.random.uniform(kw, (fan_out, fan_in), jnp.float32, -bound, bound)
        b = jax.random.uniform(kb, (fan_out, 1), jnp.float32, -bound, bound)
        return w, b

    w1, b1 = lin(k1, k2, input_size, 128)    # fc1: Linear(input_size, 128)
    w2, b2 = lin(k3, k4, 128, 64)            # fc2: Linear(128, 64)
    w3, b3 = lin(k5, k6, 64, 1)              # fc3: Linear(64, 1)
    return {"w1": w1, "b1": b1, "w2": w2, "b2": b2,
            "w3": w3.T, "b3": b3}            # w3 stored as a (64, 1) column


def reference_forward(x, p, matmul_dtype=jnp.float32):
    """Pure-JAX reference.  matmul_dtype=bf16 mirrors the kernel's MXU precision
    (bf16 operands, f32 accumulation) for a tight numerical check."""
    c = lambda a: a.astype(matmul_dtype)
    h1 = jnp.dot(c(x), c(p["w1"]).T, preferred_element_type=jnp.float32) + p["b1"].T
    h1 = jnp.maximum(h1, 0.0)
    h2 = jnp.dot(c(h1), c(p["w2"]).T, preferred_element_type=jnp.float32) + p["b2"].T
    h2 = jnp.maximum(h2, 0.0)
    return h2 @ p["w3"] + p["b3"]


if __name__ == "__main__":
    key = jax.random.PRNGKey(0)
    k_x, k_p = jax.random.split(key)

    batch, input_size = 8, 32
    x = jax.random.normal(k_x, (batch, input_size), jnp.float32)
    params = init_params(k_p, input_size)

    out = jax.block_until_ready(churn_predictor_forward(x, params))
    assert out.shape == (batch, 1), out.shape
    # Tight check vs a matching-precision (bf16 matmul, f32 accum) reference.
    ref_bf16 = reference_forward(x, params, jnp.bfloat16)
    assert jnp.allclose(out, ref_bf16, atol=5e-3, rtol=5e-3), "mismatch vs bf16 reference"
    # Loose check vs the full-f32 reference (bf16 MXU operands cost ~1e-2 relative).
    ref_f32 = reference_forward(x, params, jnp.float32)
    assert jnp.allclose(out, ref_f32, atol=5e-2, rtol=5e-2), "mismatch vs f32 reference"

    # Multi-tile + ragged-last-block path (B not a multiple of the tile).
    big_B = 1040
    xb = jax.random.normal(k_x, (big_B, input_size), jnp.float32)
    outb = jax.block_until_ready(churn_predictor_forward(xb, params, tile_b=512))
    assert outb.shape == (big_B, 1), outb.shape
    refb_bf16 = reference_forward(xb, params, jnp.bfloat16)
    refb_f32 = reference_forward(xb, params, jnp.float32)
    assert jnp.allclose(outb, refb_bf16, atol=5e-3, rtol=5e-3), "multi-tile mismatch (bf16 ref)"
    assert jnp.allclose(outb, refb_f32, atol=5e-2, rtol=5e-2), "multi-tile mismatch (f32 ref)"

    print("KERNEL_OK")
</pallas_src>

<mosaic_0001>
module attributes {stable_mosaic.version = 11 : i64} {
  func.func @churn_mlp_kernel(%arg0: i32, %arg1: memref<8x32xf32, #tpu.memory_space<vmem>>, %arg2: memref<128x32xbf16, #tpu.memory_space<vmem>>, %arg3: memref<128x1xf32, #tpu.memory_space<vmem>>, %arg4: memref<64x128xbf16, #tpu.memory_space<vmem>>, %arg5: memref<64x1xf32, #tpu.memory_space<vmem>>, %arg6: memref<64x1xf32, #tpu.memory_space<vmem>>, %arg7: memref<1x1xf32, #tpu.memory_space<vmem>>, %arg8: memref<1x1x8xf32, #tpu.memory_space<vmem>>) attributes {dimension_semantics = [#tpu.dimension_semantics<parallel>], iteration_bounds = array<i64: 1>, scalar_prefetch = 0 : i64, scratch_operands = 0 : i64, tpu.core_type = #tpu.core_type<tc>, window_params = [{transform_indices = @transform_0, window_bounds = array<i64: 8, 32>}, {pipeline_mode = #tpu.pipeline_mode<synchronous>, transform_indices = @transform_1, window_bounds = array<i64: 128, 32>}, {pipeline_mode = #tpu.pipeline_mode<synchronous>, transform_indices = @transform_2, window_bounds = array<i64: 128, 1>}, {pipeline_mode = #tpu.pipeline_mode<synchronous>, transform_indices = @transform_3, window_bounds = array<i64: 64, 128>}, {pipeline_mode = #tpu.pipeline_mode<synchronous>, transform_indices = @transform_4, window_bounds = array<i64: 64, 1>}, {pipeline_mode = #tpu.pipeline_mode<synchronous>, transform_indices = @transform_5, window_bounds = array<i64: 64, 1>}, {pipeline_mode = #tpu.pipeline_mode<synchronous>, transform_indices = @transform_6, window_bounds = array<i64: 1, 1>}, {transform_indices = @transform_7, window_bounds = array<i64: 1, 1, 8>}]} {
    %c0 = arith.constant 0 : index
    %c0_0 = arith.constant 0 : index
    %0 = vector.load %arg1[%c0, %c0_0] : memref<8x32xf32, #tpu.memory_space<vmem>>, vector<8x32xf32>
    %1 = arith.truncf %0 : vector<8x32xf32> to vector<8x32xbf16>
    %c0_1 = arith.constant 0 : index
    %c0_2 = arith.constant 0 : index
    %2 = vector.load %arg2[%c0_1, %c0_2] : memref<128x32xbf16, #tpu.memory_space<vmem>>, vector<128x32xbf16>
    %cst = arith.constant dense<0.000000e+00> : vector<128x8xf32>
    %3 = tpu.matmul %2, %1, %cst {dimension_numbers = #tpu.dot_dimension_numbers<[1], [1], [0], [0], [0, 0, 1, 0], [], []>} : vector<128x32xbf16>, vector<8x32xbf16>, vector<128x8xf32> -> vector<128x8xf32>
    %c0_3 = arith.constant 0 : index
    %c0_4 = arith.constant 0 : index
    %4 = vector.load %arg3[%c0_3, %c0_4] : memref<128x1xf32, #tpu.memory_space<vmem>>, vector<128x1xf32>
    %5 = vector.broadcast %4 : vector<128x1xf32> to vector<128x8xf32>
    %6 = arith.addf %3, %5 : vector<128x8xf32>
    %cst_5 = arith.constant 0.000000e+00 : f32
    %7 = vector.broadcast %cst_5 : f32 to vector<128x8xf32>
    %8 = arith.maximumf %6, %7 : vector<128x8xf32>
    %c0_6 = arith.constant 0 : index
    %c0_7 = arith.constant 0 : index
    %9 = vector.load %arg4[%c0_6, %c0_7] : memref<64x128xbf16, #tpu.memory_space<vmem>>, vector<64x128xbf16>
    %10 = arith.truncf %8 : vector<128x8xf32> to vector<128x8xbf16>
    %cst_8 = arith.constant dense<0.000000e+00> : vector<64x8xf32>
    %11 = tpu.matmul %9, %10, %cst_8 {dimension_numbers = #tpu.dot_dimension_numbers<[1], [0], [0], [1], [0, 0, 1, 1], [], []>} : vector<64x128xbf16>, vector<128x8xbf16>, vector<64x8xf32> -> vector<64x8xf32>
    %c0_9 = arith.constant 0 : index
    %c0_10 = arith.constant 0 : index
    %12 = vector.load %arg5[%c0_9, %c0_10] : memref<64x1xf32, #tpu.memory_space<vmem>>, vector<64x1xf32>
    %13 = vector.broadcast %12 : vector<64x1xf32> to vector<64x8xf32>
    %14 = arith.addf %11, %13 : vector<64x8xf32>
    %cst_11 = arith.constant 0.000000e+00 : f32
    %15 = vector.broadcast %cst_11 : f32 to vector<64x8xf32>
    %16 = arith.maximumf %14, %15 : vector<64x8xf32>
    %c0_12 = arith.constant 0 : index
    %c0_13 = arith.constant 0 : index
    %17 = vector.load %arg6[%c0_12, %c0_13] : memref<64x1xf32, #tpu.memory_space<vmem>>, vector<64x1xf32>
    %18 = vector.broadcast %17 : vector<64x1xf32> to vector<64x8xf32>
    %19 = arith.mulf %16, %18 : vector<64x8xf32>
    %cst_14 = arith.constant dense<0.000000e+00> : vector<8xf32>
    %20 = vector.multi_reduction <add>, %19, %cst_14 [0] : vector<64x8xf32> to vector<8xf32>
    %21 = vector.shape_cast %20 : vector<8xf32> to vector<1x8xf32>
    %c0_15 = arith.constant 0 : index
    %c0_16 = arith.constant 0 : index
    %22 = vector.load %arg7[%c0_15, %c0_16] : memref<1x1xf32, #tpu.memory_space<vmem>>, vector<1x1xf32>
    %23 = vector.broadcast %22 : vector<1x1xf32> to vector<1x8xf32>
    %24 = arith.addf %21, %23 : vector<1x8xf32>
    %25 = vector.shape_cast %24 : vector<1x8xf32> to vector<1x1x8xf32>
    %c0_17 = arith.constant 0 : index
    %c0_18 = arith.constant 0 : index
    %c0_19 = arith.constant 0 : index
    %26 = vector.load %arg8[%c0_17, %c0_18, %c0_19] : memref<1x1x8xf32, #tpu.memory_space<vmem>>, vector<1x1x8xf32>
    tpu.vector_store %arg8[%c0_17, %c0_18, %c0_19], %25 {strides = array<i32>} : memref<1x1x8xf32, #tpu.memory_space<vmem>>, vector<1x1x8xf32>,
    return
  }
  func.func @transform_0(%arg0: i32) -> (i32, i32) {
    %c0_i32 = arith.constant 0 : i32
    %c0_i32_0 = arith.constant 0 : i32
    return %arg0, %c0_i32 : i32, i32
  }
  func.func @transform_1(%arg0: i32) -> (i32, i32) {
    %c0_i32 = arith.constant 0 : i32
    %c0_i32_0 = arith.constant 0 : i32
    %c0_i32_1 = arith.constant 0 : i32
    return %c0_i32, %c0_i32_0 : i32, i32
  }
  func.func @transform_2(%arg0: i32) -> (i32, i32) {
    %c0_i32 = arith.constant 0 : i32
    %c0_i32_0 = arith.constant 0 : i32
    %c0_i32_1 = arith.constant 0 : i32
    return %c0_i32, %c0_i32_0 : i32, i32
  }
  func.func @transform_3(%arg0: i32) -> (i32, i32) {
    %c0_i32 = arith.constant 0 : i32
    %c0_i32_0 = arith.constant 0 : i32
    %c0_i32_1 = arith.constant 0 : i32
    return %c0_i32, %c0_i32_0 : i32, i32
  }
  func.func @transform_4(%arg0: i32) -> (i32, i32) {
    %c0_i32 = arith.constant 0 : i32
    %c0_i32_0 = arith.constant 0 : i32
    %c0_i32_1 = arith.constant 0 : i32
    return %c0_i32, %c0_i32_0 : i32, i32
  }
  func.func @transform_5(%arg0: i32) -> (i32, i32) {
    %c0_i32 = arith.constant 0 : i32
    %c0_i32_0 = arith.constant 0 : i32
    %c0_i32_1 = arith.constant 0 : i32
    return %c0_i32, %c0_i32_0 : i32, i32
  }
  func.func @transform_6(%arg0: i32) -> (i32, i32) {
    %c0_i32 = arith.constant 0 : i32
    %c0_i32_0 = arith.constant 0 : i32
    %c0_i32_1 = arith.constant 0 : i32
    return %c0_i32, %c0_i32_0 : i32, i32
  }
  func.func @transform_7(%arg0: i32) -> (i32, i32, i32) {
    %c0_i32 = arith.constant 0 : i32
    %c0_i32_0 = arith.constant 0 : i32
    %c0_i32_1 = arith.constant 0 : i32
    return %arg0, %c0_i32, %c0_i32_0 : i32, i32, i32
  }
}

</mosaic_0001>

<bundles_post_ra>
// kernel: tpu_custom_call.1
= control target key start
LH: loop header
LB: loop body
LE: loop exit
PB: predicated region body
PF: predicated region fallthrough
CT: control target
= control target key end

     0   :  { %s820_s0 = inlined_call_operand.vmem [shape: f32[8,32], index: 0, kind: input, shape index: {}]   ;;  %s821_s1 = inlined_call_operand.vmem [shape: bf16[128,32], index: 1, kind: input, shape index: {}]   ;;  %s822_s2 = inlined_call_operand.vmem [shape: f32[128,1], index: 2, kind: input, shape index: {}]   ;;  %s823_s3 = inlined_call_operand.vmem [shape: bf16[64,128], index: 3, kind: input, shape index: {}]   ;;  %s824_s4 = inlined_call_operand.vmem [shape: f32[64,1], index: 4, kind: input, shape index: {}]   ;;  %s825_s5 = inlined_call_operand.vmem [shape: f32[64,1], index: 5, kind: input, shape index: {}]   ;;  %s826_s6 = inlined_call_operand.<no memory space> [shape: f32[1,1], index: 6, kind: input, shape index: {}]   ;;  %s827_s7 = inlined_call_operand.hbm [shape: f32[1,1,8], index: 7, kind: output, shape index: {}]  }
   0x1   :  { %v12_v0 = vstv %s826_s6 }
   0x2   :  { %13 = vst [vmem:[#allocation2] sm:$0x1] %v12_v0 }
   0x3   :  { %v62_v1 = vld [vmem:[%s822_s2 + $0x70] sm:$0xff]  ;;  %v60_v2 = vld [vmem:[%s822_s2 + $0x60] sm:$0xff]  ;;  %vm184_vm0 = vcmask 261120   ;;  %v614_v4 = vmov 0   ;;  %v63_v8 = vld [vmem:[%s822_s2 + $0x78] sm:$0xff] }
   0x4   :  { %v30_v3 = vld [vmem:[%s820_s0] sm:$0xff]  ;;  %586 = vset.pattern.permute.xlu1 %v614_v4  ;;  %585 = vset.pattern.permute.xlu0 %v614_v4  ;;  %v58_v7 = vld [vmem:[%s822_s2 + $0x50] sm:$0xff] }
   0x5   :  { %v31_v5 = vpack.c.bf16 %v30_v3, %v30_v3  ;;  %136 = vperm.xlu0 %585, %v62_v1   ;;  %126 = vperm.xlu1 %586, %v60_v2  }
   0x6   :  { %587 = vset.pattern.permute.xlu2 %v614_v4 }
   0x7   :  { %v210_v6 = vsel %vm184_vm0, %v31_v5, 0  ;;  %116 = vperm.xlu2 %587, %v58_v7  }
   0x8   :  { %219 = vmatpush.bf16.xpose.msra.mxu0 %v210_v6  ;;  %574 = vmatpush.bf16.xpose.msra.mxu2 %v210_v6 }
   0x9   :  { %14 = vsyncpa [#allocation4], 0  ;;  %v61_v9 = vld [vmem:[%s822_s2 + $0x68] sm:$0xff]  ;;  %v562_v10 = vld [vmem:[%s821_s1] sm:$0xff]  ;;  %vm458_vm1 = vcmask 64512   ;;  %s497_s14 = sshll.u32 %s827_s7, 4  ;;  %s498_s14 = int_to_ptr.hbm [resolvable:$true] %s497_s14 }
   0xa   :  { %v566_v11 = vld [vmem:[%s821_s1 + $0x20] sm:$0xff]  ;;  %v59_v12 = vld [vmem:[%s822_s2 + $0x58] sm:$0xff]  ;;  %v57_v13 = vld [vmem:[%s822_s2 + $0x48] sm:$0xff]  ;;  %vm488_vm2 = vcmask 57344  }
   0xb   :  { %v56_v14 = vld [vmem:[%s822_s2 + $0x40] sm:$0xff]  ;;  %v54_v15 = vld [vmem:[%s822_s2 + $0x30] sm:$0xff]  ;;  %v55_v16 = vld [vmem:[%s822_s2 + $0x38] sm:$0xff] }
   0xc   :  { %v52_v17 = vld [vmem:[%s822_s2 + $0x20] sm:$0xff]  ;;  %v563_v18 = vld [vmem:[%s821_s1 + $0x8] sm:$0xff]  ;;  %v51_v21 = vld [vmem:[%s822_s2 + $0x18] sm:$0xff] }
   0xd   :  { %141 = vperm.xlu0 %585, %v63_v8   ;;  %131 = vperm.xlu1 %586, %v61_v9   ;;  %v567_v19 = vld [vmem:[%s821_s1 + $0x28] sm:$0xff]  ;;  %v50_v22 = vld [vmem:[%s822_s2 + $0x10] sm:$0xff]  ;;  %v48_v23 = vld [vmem:[%s822_s2] sm:$0xff] }
   0xe   :  { %v53_v20 = vld [vmem:[%s822_s2 + $0x28] sm:$0xff]  ;;  %v293_v24 = vld [vmem:[%s824_s4] sm:$0xff]  ;;  %v564_v26 = vld [vmem:[%s821_s1 + $0x10] sm:$0xff] }
   0xf   :  { %538 = vmatmul.msk.bf16.vlgmr.msra.gmra.mxu0 %vm184_vm0, %v562_v10  ;;  %542 = vmatmul.msk.bf16.vlgmr.msra.gmra.mxu2 %vm184_vm0, %v566_v11  ;;  %v49_v25 = vld [vmem:[%s822_s2 + $0x8] sm:$0xff]  ;;  %v568_v27 = vld [vmem:[%s821_s1 + $0x30] sm:$0xff]  ;;  %v296_v29 = vld [vmem:[%s824_s4 + $0x18] sm:$0xff] }
  0x10   :  { %121 = vperm.xlu2 %587, %v59_v12   ;;  %v294_v28 = vld [vmem:[%s824_s4 + $0x8] sm:$0xff]  ;;  %v295_v30 = vld [vmem:[%s824_s4 + $0x10] sm:$0xff]  ;;  %v297_v31 = vld [vmem:[%s824_s4 + $0x20] sm:$0xff] }
  0x11   :  { %v402_v32 = vld [vmem:[%s825_s5] sm:$0xff]  ;;  %v298_v33 = vld [vmem:[%s824_s4 + $0x28] sm:$0xff]  ;;  %v565_v34 = vld [vmem:[%s821_s1 + $0x18] sm:$0xff] }
  0x12   :  { %v569_v35 = vld [vmem:[%s821_s1 + $0x38] sm:$0xff]  ;;  %v403_v36 = vld [vmem:[%s825_s5 + $0x8] sm:$0xff]  ;;  %v404_v38 = vld [vmem:[%s825_s5 + $0x10] sm:$0xff] }
  0x13   :  { %v405_v37 = vld [vmem:[%s825_s5 + $0x18] sm:$0xff]  ;;  %v299_v39 = vld [vmem:[%s824_s4 + $0x30] sm:$0xff]  ;;  %v406_v41 = vld [vmem:[%s825_s5 + $0x20] sm:$0xff] }
  0x14   :  { %v300_v40 = vld [vmem:[%s824_s4 + $0x38] sm:$0xff]  ;;  %v407_v42 = vld [vmem:[%s825_s5 + $0x28] sm:$0xff]  ;;  %v408_v44 = vld [vmem:[%s825_s5 + $0x30] sm:$0xff] }
  0x15   :  { %111 = vperm.xlu1 %586, %v57_v13   ;;  %106 = vperm.xlu0 %585, %v56_v14   ;;  %v409_v43 = vld [vmem:[%s825_s5 + $0x38] sm:$0xff]  ;;  %v480_v45 = vld [vmem:[#allocation2] sm:$0x1] }
  0x18   :  { %96 = vperm.xlu2 %587, %v54_v15  }
  0x1d   :  { %101 = vperm.xlu0 %585, %v55_v16   ;;  %86 = vperm.xlu1 %586, %v52_v17  }
  0x1f   :  { %539 = vmatmul.msk.bf16.gmra.mxu0 %vm184_vm0, %v563_v18  ;;  %543 = vmatmul.msk.bf16.gmra.mxu2 %vm184_vm0, %v567_v19 }
  0x20   :  { %91 = vperm.xlu2 %587, %v53_v20  }
  0x25   :  { %81 = vperm.xlu1 %586, %v51_v21   ;;  %76 = vperm.xlu0 %585, %v50_v22  }
  0x28   :  { %66 = vperm.xlu2 %587, %v48_v23  }
  0x2d   :  { %303 = vperm.xlu1 %586, %v293_v24   ;;  %71 = vperm.xlu0 %585, %v49_v25  }
  0x2f   :  { %540 = vmatmul.msk.bf16.gmra.mxu0 %vm184_vm0, %v564_v26  ;;  %544 = vmatmul.msk.bf16.gmra.mxu2 %vm184_vm0, %v568_v27 }
  0x30   :  { %308 = vperm.xlu2 %587, %v294_v28  }
  0x35   :  { %318 = vperm.xlu1 %586, %v296_v29   ;;  %313 = vperm.xlu0 %585, %v295_v30  }
  0x38   :  { %323 = vperm.xlu2 %587, %v297_v31  }
  0x3d   :  { %412 = vperm.xlu1 %586, %v402_v32   ;;  %328 = vperm.xlu0 %585, %v298_v33  }
  0x3f   :  { %541 = vmatmul.msk.bf16.gmra.mxu0 %vm184_vm0, %v565_v34  ;;  %545 = vmatmul.msk.bf16.gmra.mxu2 %vm184_vm0, %v569_v35 }
  0x40   :  { %417 = vperm.xlu2 %587, %v403_v36  }
  0x45   :  { %427 = vperm.xlu1 %586, %v405_v37   ;;  %422 = vperm.xlu0 %585, %v404_v38  }
  0x48   :  { %333 = vperm.xlu2 %587, %v299_v39  }
  0x4d   :  { %338 = vperm.xlu1 %586, %v300_v40   ;;  %432 = vperm.xlu0 %585, %v406_v41  }
  0x50   :  { %437 = vperm.xlu2 %587, %v407_v42  }
  0x55   :  { %447 = vperm.xlu1 %586, %v409_v43   ;;  %442 = vperm.xlu0 %585, %v408_v44  }
  0x58   :  { %483 = vperm.xlu2 %587, %v480_v45  }
  0x61   :  { %v117_v58 = vpop.permute.xlu2 %116 }
  0x6a   :  { %v122_v0 = vpop.permute.xlu2 %121 }
  0x72   :  { %v97_v8 = vpop.permute.xlu2 %96 }
  0x77   :  { %v137_v54 = vpop.permute.xlu0 %136  ;;  %v127_v56 = vpop.permute.xlu1 %126 }
  0x7a   :  { %v92_v26 = vpop.permute.xlu2 %91 }
  0x7f   :  { %v142_v59 = vpop.permute.xlu0 %141  ;;  %v132_v61 = vpop.permute.xlu1 %131 }
  0x82   :  { %v67_v43 = vpop.permute.xlu2 %66 }
  0x87   :  { %v107_v1 = vpop.permute.xlu0 %106  ;;  %v112_v2 = vpop.permute.xlu1 %111 }
  0x8c   :  { %v791_v46 = vpop.f32.mrf.mxu0 }
  0x8d   :  { %v222_v44 = vadd.f32 %v791_v46, %v67_v43  ;;  %v571_v46 = vld [vmem:[%s823_s3 + $0x8] sm:$0xff] }
  0x8f   :  { %v102_v12 = vpop.permute.xlu0 %101  ;;  %v87_v21 = vpop.permute.xlu1 %86 }
  0x92   :  { %v241_v47 = vpop.f32.mrf.mxu2 }
  0x93   :  { %v242_v22 = vadd.f32 %v241_v47, %v107_v1 }
  0x94   :  { %v793_v48 = vpop.f32.mrf.mxu0 }
  0x95   :  { %v269_v30 = vmax.f32 %v242_v22, 0.0 }
  0x97   :  { %v77_v31 = vpop.permute.xlu0 %76  ;;  %v82_v37 = vpop.permute.xlu1 %81 }
  0x9a   :  { %v243_v49 = vpop.f32.mrf.mxu2 }
  0x9b   :  { %v244_v18 = vadd.f32 %v243_v49, %v112_v2 }
  0x9c   :  { %v226_v50 = vpop.f32.mrf.mxu0 }
  0x9d   :  { %v270_v25 = vmax.f32 %v244_v18, 0.0  ;;  %v227_v38 = vadd.f32 %v226_v50, %v77_v31 }
  0x9f   :  { %v289_v32 = vpack.c.bf16 %v270_v25, %v269_v30  ;;  %v72_v45 = vpop.permute.xlu0 %71  ;;  %v263_v47 = vmax.f32 %v227_v38, 0.0 }
  0xa0   :  { %v224_v49 = vadd.f32 %v793_v48, %v72_v45  ;;  %v572_v48 = vld [vmem:[%s823_s3 + $0x10] sm:$0xff] }
  0xa2   :  { %v246_v51 = vpop.f32.mrf.mxu2 }
  0xa3   :  { %v247_v16 = vadd.f32 %v246_v51, %v117_v58  ;;  %v304_v58 = vpop.permute.xlu1 %303 }
  0xa4   :  { %v228_v53 = vpop.f32.mrf.mxu0 }
  0xa5   :  { %v271_v24 = vmax.f32 %v247_v16, 0.0  ;;  %v229_v39 = vadd.f32 %v228_v53, %v82_v37 }
  0xa7   :  { %v264_v51 = vmax.f32 %v229_v39, 0.0 }
  0xa9   :  { %v286_v50 = vpack.c.bf16 %v264_v51, %v263_v47 }
  0xaa   :  { %v248_v52 = vpop.f32.mrf.mxu2 }
  0xab   :  { %v249_v13 = vadd.f32 %v248_v52, %v122_v0 }
  0xac   :  { %v231_v57 = vpop.f32.mrf.mxu0 }
  0xad   :  { %v272_v19 = vmax.f32 %v249_v13, 0.0  ;;  %v232_v33 = vadd.f32 %v231_v57, %v87_v21  ;;  %v573_v57 = vld [vmem:[%s823_s3 + $0x18] sm:$0xff] }
  0xaf   :  { %v290_v29 = vpack.c.bf16 %v272_v19, %v271_v24  ;;  %v265_v40 = vmax.f32 %v232_v33, 0.0 }
  0xb2   :  { %v251_v55 = vpop.f32.mrf.mxu2 }
  0xb3   :  { %v252_v9 = vadd.f32 %v251_v55, %v127_v56  ;;  %v262_v55 = vmax.f32 %v224_v49, 0.0  ;;  %v570_v56 = vld [vmem:[%s823_s3] sm:$0xff]  ;;  %s615_s3 = smov [#allocation3]  }
  0xb4   :  { %v233_v62 = vpop.f32.mrf.mxu0  ;;  %s495_s0 = sshll.u32 %s615_s3, 4  ;;  %s496_s0 = int_to_ptr.vmem [resolvable:$true] %s495_s0 }
  0xb5   :  { %v273_v17 = vmax.f32 %v252_v9, 0.0  ;;  %v234_v34 = vadd.f32 %v233_v62, %v92_v26  ;;  %v319_v62 = vpop.permute.xlu1 %318 }
  0xb7   :  { %v266_v41 = vmax.f32 %v234_v34, 0.0 }
  0xb9   :  { %v287_v52 = vpack.c.bf16 %v266_v41, %v265_v40 }
  0xba   :  { %v253_v60 = vpop.f32.mrf.mxu2 }
  0xbb   :  { %v254_v6 = vadd.f32 %v253_v60, %v132_v61  ;;  %v314_v60 = vpop.permute.xlu0 %313 }
  0xbc   :  { %v236_v4 = vpop.f32.mrf.mxu0 }
  0xbd   :  { %v274_v14 = vmax.f32 %v254_v6, 0.0  ;;  %v237_v27 = vadd.f32 %v236_v4, %v97_v8 }
  0xbf   :  { %v291_v20 = vpack.c.bf16 %v274_v14, %v273_v17  ;;  %v267_v35 = vmax.f32 %v237_v27, 0.0 }
  0xc2   :  { %v256_v63 = vpop.f32.mrf.mxu2 }
  0xc3   :  { %v257_v3 = vadd.f32 %v256_v63, %v137_v54  ;;  %v261_v54 = vmax.f32 %v222_v44, 0.0  ;;  %v329_v1 = vpop.permute.xlu0 %328 }
  0xc4   :  { %v238_v23 = vpop.f32.mrf.mxu0 }
  0xc5   :  { %v275_v10 = vmax.f32 %v257_v3, 0.0  ;;  %v239_v28 = vadd.f32 %v238_v23, %v102_v12  ;;  %v285_v53 = vpack.c.bf16 %v262_v55, %v261_v54  ;;  %v413_v3 = vpop.permute.xlu1 %412 }
  0xc7   :  { %v268_v36 = vmax.f32 %v239_v28, 0.0 }
  0xc9   :  { %v288_v42 = vpack.c.bf16 %v268_v36, %v267_v35 }
  0xca   :  { %v258_v5 = vpop.f32.mrf.mxu2 }
  0xcb   :  { %v259_v7 = vadd.f32 %v258_v5, %v142_v59  ;;  %v309_v59 = vpop.permute.xlu2 %308 }
  0xcd   :  { %v276_v11 = vmax.f32 %v259_v7, 0.0  ;;  %v423_v7 = vpop.permute.xlu0 %422 }
  0xcf   :  { %v292_v15 = vpack.c.bf16 %v276_v11, %v275_v10  ;;  %v428_v11 = vpop.permute.xlu1 %427 }
  0xd1   :  { %365 = vmatpush.bf16.msra.mxu1 %v292_v15  ;;  %575 = vmatpush.bf16.msra.mxu3 %v292_v15 }
  0xd3   :  { %v324_v63 = vpop.permute.xlu2 %323 }
  0xd5   :  { %366 = vmatpush.bf16.msra.mxu1 %v291_v20  ;;  %576 = vmatpush.bf16.msra.mxu3 %v291_v20  ;;  %v433_v19 = vpop.permute.xlu0 %432 }
  0xd9   :  { %367 = vmatpush.bf16.msra.mxu1 %v290_v29  ;;  %577 = vmatpush.bf16.msra.mxu3 %v290_v29 }
  0xdb   :  { %v418_v4 = vpop.permute.xlu2 %417 }
  0xdd   :  { %368 = vmatpush.bf16.msra.mxu1 %v289_v32  ;;  %578 = vmatpush.bf16.msra.mxu3 %v289_v32  ;;  %v339_v32 = vpop.permute.xlu1 %338  ;;  %v443_v40 = vpop.permute.xlu0 %442 }
  0xe1   :  { %369 = vmatpush.bf16.msra.mxu1 %v288_v42  ;;  %579 = vmatpush.bf16.msra.mxu3 %v288_v42 }
  0xe3   :  { %v334_v16 = vpop.permute.xlu2 %333 }
  0xe5   :  { %370 = vmatpush.bf16.msra.mxu1 %v287_v52  ;;  %580 = vmatpush.bf16.msra.mxu3 %v287_v52  ;;  %v448_v55 = vpop.permute.xlu1 %447 }
  0xe9   :  { %371 = vmatpush.bf16.msra.mxu1 %v286_v50  ;;  %581 = vmatpush.bf16.msra.mxu3 %v286_v50 }
  0xeb   :  { %v438_v36 = vpop.permute.xlu2 %437 }
  0xed   :  { %372 = vmatpush.bf16.msra.mxu1 %v285_v53  ;;  %582 = vmatpush.bf16.msra.mxu3 %v285_v53 }
  0xf0   :  { %373 = vmatmul.bf16.vlgmr.msra.gmra.mxu1 %v570_v56  ;;  %378 = vmatmul.bf16.vlgmr.msra.gmra.mxu3 %v571_v46 }
 0x100   :  { %383 = vmatmul.bf16.gmra.mxu3 %v572_v48 }
 0x110   :  { %388 = vmatmul.bf16.gmra.mxu3 %v573_v57 }
 0x16d   :  { %v374_v0 = vpop.f32.mrf.mxu1 }
 0x16e   :  { %v375_v9 = vadd.f32 %v374_v0, %v304_v58 }
 0x170   :  { %v394_v12 = vmax.f32 %v375_v9, 0.0 }
 0x172   :  { %v450_v20 = vmul.f32 %v413_v3, %v394_v12 }
 0x173   :  { %v379_v61 = vpop.f32.mrf.mxu3 }
 0x174   :  { %v380_v14 = vadd.f32 %v379_v61, %v314_v60  ;;  %v459_v26 = vsel %vm458_vm1, %v450_v20, 0.0  ;;  %v484_v61 = vpop.permute.xlu2 %483 }
 0x175   :  { %v376_v5 = vpop.f32.mrf.mxu1 }
 0x176   :  { %v377_v8 = vadd.f32 %v376_v5, %v309_v59  ;;  %v396_v21 = vmax.f32 %v380_v14, 0.0 }
 0x178   :  { %v395_v10 = vmax.f32 %v377_v8, 0.0  ;;  %v452_v28 = vmul.f32 %v423_v7, %v396_v21 }
 0x17a   :  { %v451_v17 = vmul.f32 %v418_v4, %v395_v10  ;;  %v462_v37 = vsel %vm458_vm1, %v452_v28, 0.0 }
 0x17b   :  { %v381_v2 = vpop.f32.mrf.mxu3 }
 0x17c   :  { %v382_v15 = vadd.f32 %v381_v2, %v319_v62  ;;  %v460_v24 = vsel %vm458_vm1, %v451_v17, 0.0 }
 0x17d   :  { %v461_v33 = vadd.f32 %v460_v24, %v459_v26 }
 0x17e   :  { %v397_v22 = vmax.f32 %v382_v15, 0.0 }
 0x17f   :  { %v463_v41 = vadd.f32 %v462_v37, %v461_v33 }
 0x180   :  { %v453_v29 = vmul.f32 %v428_v11, %v397_v22 }
 0x182   :  { %v464_v38 = vsel %vm458_vm1, %v453_v29, 0.0 }
 0x183   :  { %v384_v6 = vpop.f32.mrf.mxu3  ;;  %v465_v44 = vadd.f32 %v464_v38, %v463_v41 }
 0x184   :  { %v385_v18 = vadd.f32 %v384_v6, %v324_v63  ;;  %v486_v63 = vperm.slane %v484_v61, 0 }
 0x186   :  { %v398_v25 = vmax.f32 %v385_v18, 0.0 }
 0x188   :  { %v454_v34 = vmul.f32 %v433_v19, %v398_v25 }
 0x18a   :  { %v466_v42 = vsel %vm458_vm1, %v454_v34, 0.0 }
 0x18b   :  { %v386_v13 = vpop.f32.mrf.mxu3  ;;  %v467_v51 = vadd.f32 %v466_v42, %v465_v44 }
 0x18c   :  { %v387_v23 = vadd.f32 %v386_v13, %v329_v1 }
 0x18e   :  { %v399_v30 = vmax.f32 %v387_v23, 0.0 }
 0x190   :  { %v455_v39 = vmul.f32 %v438_v36, %v399_v30 }
 0x192   :  { %v468_v47 = vsel %vm458_vm1, %v455_v39, 0.0 }
 0x193   :  { %v389_v27 = vpop.f32.mrf.mxu3  ;;  %v469_v50 = vadd.f32 %v468_v47, %v467_v51 }
 0x194   :  { %v390_v31 = vadd.f32 %v389_v27, %v334_v16 }
 0x196   :  { %v400_v35 = vmax.f32 %v390_v31, 0.0 }
 0x198   :  { %v456_v43 = vmul.f32 %v443_v40, %v400_v35 }
 0x19a   :  { %v470_v52 = vsel %vm458_vm1, %v456_v43, 0.0 }
 0x19b   :  { %v391_v45 = vpop.f32.mrf.mxu3  ;;  %v471_v56 = vadd.f32 %v470_v52, %v469_v50 }
 0x19c   :  { %v392_v49 = vadd.f32 %v391_v45, %v339_v32 }
 0x19e   :  { %v401_v54 = vmax.f32 %v392_v49, 0.0 }
 0x1a0   :  { %v457_v53 = vmul.f32 %v448_v55, %v401_v54 }
 0x1a2   :  { %v472_v46 = vsel %vm458_vm1, %v457_v53, 0.0 }
 0x1a3   :  { %v473_v48 = vadd.f32 %v472_v46, %v471_v56 }
 0x1a5   :  { %v474_v57 = vrot.slane %v473_v48, 4 }
 0x1a7   :  { %v475_v58 = vadd.f32 %v474_v57, %v473_v48 }
 0x1a9   :  { %v476_v59 = vrot.slane %v475_v58, 2 }
 0x1ab   :  { %v477_v60 = vadd.f32 %v476_v59, %v475_v58 }
 0x1ad   :  { %v478_v62 = vrot.slane %v477_v60, 1 }
 0x1af   :  { %v479_v0 = vadd.f32 %v478_v62, %v477_v60 }
 0x1b1   :  { %v487_v1 = vadd.f32 %v486_v63, %v479_v0 }
 0x1b3   :  { %489 = vst.msk [vmem:[#allocation3] sm:$0x1] %vm488_vm2, %v487_v1 }
 0x1b4   :  { %500 = dma.vmem_to_hbm [thread:$0]  %s496_s0, 16, %s498_s14, [#allocation4]  }
 0x1b5   :  { %612 = dma.done.wait [#allocation4], 16  }
 0x1b6   :  { %613 = vsyncadd [#allocation4], 4294967280 }
 0x1b7   :  { %505 = vsyncpa [#allocation4], 1 }

</bundles_post_ra>
